<compile_context>
chip_gen: v5e
topology: v5e:2x2
jax: 0.10.0
libtpu: 0.0.40
codegen_flags: <defaults>
</compile_context>

<pallas_src>
import functools
import math

import jax
import jax.numpy as jnp
from jax.experimental import pallas as pl
from jax.experimental.pallas import tpu as pltpu

# ----------------------------- model config ---------------------------------
D_MODEL = 32
HEADS = 4
D_K = D_MODEL // HEADS
D_FF = 64
N_LAYERS = 2
VOCAB = 50
MAX_SEQ = 64
LN_EPS = 1e-5

_HI = jax.lax.Precision.HIGHEST   # reference-side matmul precision (true f32)


# ------------------------------ shared math ----------------------------------
def _layer_norm(h, g, b):
    # one-pass variance (review micro-opt): var = E[h^2] - mu^2
    mu = jnp.mean(h, axis=-1, keepdims=True)
    var = jnp.mean(h * h, axis=-1, keepdims=True) - mu * mu
    return (h - mu) * jax.lax.rsqrt(var + LN_EPS) * g + b


# --------------------------- fused encoder kernel ----------------------------
def _encoder_stack_kernel(
    src_ref, pe_ref, mmean_ref, embed_ref,
    wv_ref, bv_ref, wo_ref, bo_ref,
    w1_ref, b1_ref, w2_ref, b2_ref,
    ln1_g_ref, ln1_b_ref, ln2_g_ref, ln2_b_ref,
    lnf_g_ref, lnf_b_ref,
    o_ref, *, n_layers, vocab):
    """Single step over the whole (B*S, D) slab; everything stays in VMEM."""
    bs = src_ref.shape[0]

    # ---- fused embedding gather (one-hot MXU matmul) + positional encoding --
    ids = src_ref[...]                                          # (B*S, 1) int32
    vocab_iota = jax.lax.broadcasted_iota(jnp.int32, (bs, vocab), 1)
    onehot = jnp.where(ids == vocab_iota, 1.0, 0.0)             # (B*S, V) f32
    x = jnp.dot(onehot, embed_ref[...],
                preferred_element_type=jnp.float32) + pe_ref[...]

    mmean = mmean_ref[...]      # (B*S, B*S) block-diag 1/S: per-batch mean op

    for l in range(n_layers):                                   # static unroll
        # Attention under the reference's mask bug: softmax is exactly uniform,
        # so attention = per-batch mean of V.  By linearity mean(x@Wv + bv) =
        # mean(x)@Wv + bv; `mmean @ x` puts the batch mean in every row, then a
        # single Wv->Wo projection gives x2.  Q/K projections, QK^T, softmax
        # and P@V are dead compute and are skipped entirely.
        xm = jnp.dot(mmean, x, preferred_element_type=jnp.float32)
        x2 = jnp.dot(
            jnp.dot(xm, wv_ref[l], preferred_element_type=jnp.float32) + bv_ref[l],
            wo_ref[l], preferred_element_type=jnp.float32) + bo_ref[l]
        x = _layer_norm(x + x2, ln1_g_ref[l], ln1_b_ref[l])

        # ---- position-wise feed-forward (fused; h never leaves VMEM/vregs) --
        h = jnp.maximum(
            jnp.dot(x, w1_ref[l], preferred_element_type=jnp.float32) + b1_ref[l],
            0.0)
        y = jnp.dot(h, w2_ref[l], preferred_element_type=jnp.float32) + b2_ref[l]
        x = _layer_norm(x + y, ln2_g_ref[l], ln2_b_ref[l])

    # ---- final LayerNorm ----------------------------------------------------
    o_ref[...] = _layer_norm(x, lnf_g_ref[...], lnf_b_ref[...]).astype(o_ref.dtype)


def encoder_stack(src2d, pe_bs, mmean, params):
    """(B*S, 1) int32 token ids -> (B*S, D) f32 encoder output, one pallas_call."""
    bs = src2d.shape[0]
    weights = [
        params["embed"],
        params["wv"], params["bv"], params["wo"], params["bo"],
        params["w1"], params["b1"], params["w2"], params["b2"],
        params["ln1_g"], params["ln1_b"], params["ln2_g"], params["ln2_b"],
        params["ln_g"], params["ln_b"],
    ]
    inputs = [src2d, pe_bs, mmean] + weights
    kern = functools.partial(_encoder_stack_kernel,
                             n_layers=N_LAYERS, vocab=VOCAB)
    vmem = pl.BlockSpec(memory_space=pltpu.MemorySpace.VMEM)
    return pl.pallas_call(
        kern,
        out_shape=jax.ShapeDtypeStruct((bs, D_MODEL), jnp.float32),
        in_specs=[vmem] * len(inputs),   # whole-array VMEM blocks, no grid
        out_specs=vmem,
    )(*inputs)


# ------------------------------ parameter init ------------------------------
def _init_linear(key, fan_in, fan_out):
    k1, k2 = jax.random.split(key)
    lim = 1.0 / math.sqrt(fan_in)
    w = jax.random.uniform(k1, (fan_in, fan_out), jnp.float32, -lim, lim)
    b = jax.random.uniform(k2, (1, fan_out), jnp.float32, -lim, lim)
    return w, b


def _make_pe_table(max_seq, d_model):
    # Exact reproduction of the reference PositionalEncoding formulas.
    pos = jnp.arange(max_seq, dtype=jnp.float32)[:, None]           # (S, 1)
    i_even = jnp.arange(0, d_model, 2, dtype=jnp.float32)[None, :]  # (1, D/2)
    pe_sin = jnp.sin(pos / (10000.0 ** (2.0 * i_even / d_model)))
    pe_cos = jnp.cos(pos / (10000.0 ** (2.0 * (i_even + 1.0) / d_model)))
    return jnp.stack([pe_sin, pe_cos], axis=-1).reshape(max_seq, d_model)


def init_params(key):
    keys = jax.random.split(key, 1 + N_LAYERS)
    layers = []
    for n in range(N_LAYERS):
        lk = jax.random.split(keys[1 + n], 6)
        wq, bq = _init_linear(lk[0], D_MODEL, D_MODEL)   # dead w.r.t. output
        wk, bk = _init_linear(lk[1], D_MODEL, D_MODEL)   # dead w.r.t. output
        wv, bv = _init_linear(lk[2], D_MODEL, D_MODEL)
        wo, bo = _init_linear(lk[3], D_MODEL, D_MODEL)
        w1, b1 = _init_linear(lk[4], D_MODEL, D_FF)
        w2, b2 = _init_linear(lk[5], D_FF, D_MODEL)
        layers.append(dict(
            wq=wq, bq=bq, wk=wk, bk=bk, wv=wv, bv=bv, wo=wo, bo=bo,
            w1=w1, b1=b1, w2=w2, b2=b2,
            ln1_g=jnp.ones((1, D_MODEL), jnp.float32),
            ln1_b=jnp.zeros((1, D_MODEL), jnp.float32),
            ln2_g=jnp.ones((1, D_MODEL), jnp.float32),
            ln2_b=jnp.zeros((1, D_MODEL), jnp.float32),
        ))
    # stack per-layer params along a leading layer dim for the fused kernel
    params = {name: jnp.stack([l[name] for l in layers], axis=0)
              for name in layers[0]}
    params["embed"] = jax.random.normal(keys[0], (VOCAB, D_MODEL), jnp.float32)
    params["pe"] = _make_pe_table(MAX_SEQ, D_MODEL)
    params["ln_g"] = jnp.ones((1, D_MODEL), jnp.float32)
    params["ln_b"] = jnp.zeros((1, D_MODEL), jnp.float32)
    return params


# ------------------------------ encoder forward -----------------------------
@jax.jit
def encoder_forward(src, params):
    B, S = src.shape
    src2d = src.reshape(B * S, 1).astype(jnp.int32)
    # Tiny weight-like constants for the fused kernel (built once per compile):
    pe_bs = jnp.tile(params["pe"][:S], (B, 1))                      # (B*S, D)
    batch_id = jnp.arange(B * S, dtype=jnp.int32) // S
    mmean = (batch_id[:, None] == batch_id[None, :]).astype(jnp.float32) / S
    out = encoder_stack(src2d, pe_bs, mmean, params)
    return out.reshape(B, S, D_MODEL)


# --------------- literal pure-JAX reference (for verification) ---------------
def _ref_layer_norm(h, g, b):
    mu = jnp.mean(h, axis=-1, keepdims=True)
    var = jnp.mean((h - mu) ** 2, axis=-1, keepdims=True)
    return (h - mu) / jnp.sqrt(var + LN_EPS) * g + b


def _mm(a, b):
    return jnp.dot(a, b, precision=_HI, preferred_element_type=jnp.float32)


@jax.jit
def reference_forward(src, params):
    B, S = src.shape
    x = jnp.take(params["embed"], src, axis=0) + params["pe"][None, :S, :]
    for l in range(N_LAYERS):
        xf = x.reshape(B * S, D_MODEL)
        q = _mm(xf, params["wq"][l]) + params["bq"][l]
        k = _mm(xf, params["wk"][l]) + params["bk"][l]
        v = _mm(xf, params["wv"][l]) + params["bv"][l]
        heads = lambda t: t.reshape(B, S, HEADS, D_K).transpose(0, 2, 1, 3)
        qh, kh, vh = heads(q), heads(k), heads(v)
        scores = jnp.einsum("bhqd,bhkd->bhqk", qh, kh,
                            precision=_HI) / math.sqrt(D_K)
        mask = jnp.tril(jnp.zeros_like(scores))          # all zeros (faithful bug)
        scores = jnp.where(mask == 0, -1.0e9, scores)
        probs = jax.nn.softmax(scores, axis=-1)
        attn = jnp.einsum("bhqk,bhkd->bhqd", probs, vh, precision=_HI)
        concat = attn.transpose(0, 2, 1, 3).reshape(B * S, D_MODEL)
        x2 = _mm(concat, params["wo"][l]) + params["bo"][l]
        x1 = _ref_layer_norm(xf + x2, params["ln1_g"][l], params["ln1_b"][l])
        h = jax.nn.relu(_mm(x1, params["w1"][l]) + params["b1"][l])
        y = _mm(h, params["w2"][l]) + params["b2"][l]
        x = _ref_layer_norm(x1 + y, params["ln2_g"][l],
                            params["ln2_b"][l]).reshape(B, S, D_MODEL)
    xf = x.reshape(B * S, D_MODEL)
    return _ref_layer_norm(xf, params["ln_g"], params["ln_b"]).reshape(B, S, D_MODEL)


# ----------------------------------- main ------------------------------------
if __name__ == "__main__":
    key = jax.random.PRNGKey(0)
    pkey, dkey = jax.random.split(key)
    params = init_params(pkey)

    B, S = 2, 8
    src = jax.random.randint(dkey, (B, S), 0, VOCAB, dtype=jnp.int32)

    out = jax.block_until_ready(encoder_forward(src, params))
    ref = jax.block_until_ready(reference_forward(src, params))

    assert out.shape == (B, S, D_MODEL)
    assert bool(jnp.all(jnp.isfinite(out)))
    err = float(jnp.max(jnp.abs(out - ref)))
    assert err < 1e-4, f"fused kernel deviates from reference semantics: {err}"
    print("KERNEL_OK")
</pallas_src>

<mosaic_0001>
module attributes {stable_mosaic.version = 11 : i64} {
  func.func @_encoder_stack_kernel(%arg0: memref<16x1xi32, #tpu.memory_space<vmem>>, %arg1: memref<16x32xf32, #tpu.memory_space<vmem>>, %arg2: memref<16x16xf32, #tpu.memory_space<vmem>>, %arg3: memref<50x32xf32, #tpu.memory_space<vmem>>, %arg4: memref<2x32x32xf32, #tpu.memory_space<vmem>>, %arg5: memref<2x1x32xf32, #tpu.memory_space<vmem>>, %arg6: memref<2x32x32xf32, #tpu.memory_space<vmem>>, %arg7: memref<2x1x32xf32, #tpu.memory_space<vmem>>, %arg8: memref<2x32x64xf32, #tpu.memory_space<vmem>>, %arg9: memref<2x1x64xf32, #tpu.memory_space<vmem>>, %arg10: memref<2x64x32xf32, #tpu.memory_space<vmem>>, %arg11: memref<2x1x32xf32, #tpu.memory_space<vmem>>, %arg12: memref<2x1x32xf32, #tpu.memory_space<vmem>>, %arg13: memref<2x1x32xf32, #tpu.memory_space<vmem>>, %arg14: memref<2x1x32xf32, #tpu.memory_space<vmem>>, %arg15: memref<2x1x32xf32, #tpu.memory_space<vmem>>, %arg16: memref<1x32xf32, #tpu.memory_space<vmem>>, %arg17: memref<1x32xf32, #tpu.memory_space<vmem>>, %arg18: memref<16x32xf32, #tpu.memory_space<vmem>>) attributes {dimension_semantics = [], scalar_prefetch = 0 : i64, scratch_operands = 0 : i64, tpu.core_type = #tpu.core_type<tc>} {
    %c0 = arith.constant 0 : index
    %c0_0 = arith.constant 0 : index
    %0 = vector.load %arg0[%c0, %c0_0] : memref<16x1xi32, #tpu.memory_space<vmem>>, vector<16x1xi32>
    %1 = tpu.iota {dimensions = array<i32: 1>} : vector<16x50xi32>
    %2 = vector.broadcast %0 : vector<16x1xi32> to vector<16x50xi32>
    %3 = arith.cmpi eq, %2, %1 : vector<16x50xi32>
    %cst = arith.constant 1.000000e+00 : f32
    %cst_1 = arith.constant 0.000000e+00 : f32
    %4 = vector.broadcast %cst : f32 to vector<16x50xf32>
    %5 = vector.broadcast %cst_1 : f32 to vector<16x50xf32>
    %6 = arith.select %3, %4, %5 : vector<16x50xi1>, vector<16x50xf32>
    %c0_2 = arith.constant 0 : index
    %c0_3 = arith.constant 0 : index
    %7 = vector.load %arg3[%c0_2, %c0_3] : memref<50x32xf32, #tpu.memory_space<vmem>>, vector<50x32xf32>
    %cst_4 = arith.constant dense<0.000000e+00> : vector<16x32xf32>
    %8 = tpu.matmul %6, %7, %cst_4 {dimension_numbers = #tpu.dot_dimension_numbers<[1], [0], [0], [1], [0, 0, 1, 1], [], []>} : vector<16x50xf32>, vector<50x32xf32>, vector<16x32xf32> -> vector<16x32xf32>
    %c0_5 = arith.constant 0 : index
    %c0_6 = arith.constant 0 : index
    %9 = vector.load %arg1[%c0_5, %c0_6] : memref<16x32xf32, #tpu.memory_space<vmem>>, vector<16x32xf32>
    %10 = arith.addf %8, %9 : vector<16x32xf32>
    %c0_7 = arith.constant 0 : index
    %c0_8 = arith.constant 0 : index
    %11 = vector.load %arg2[%c0_7, %c0_8] : memref<16x16xf32, #tpu.memory_space<vmem>>, vector<16x16xf32>
    %cst_9 = arith.constant dense<0.000000e+00> : vector<16x32xf32>
    %12 = tpu.matmul %11, %10, %cst_9 {dimension_numbers = #tpu.dot_dimension_numbers<[1], [0], [0], [1], [0, 0, 1, 1], [], []>} : vector<16x16xf32>, vector<16x32xf32>, vector<16x32xf32> -> vector<16x32xf32>
    %c0_10 = arith.constant 0 : index
    %c0_11 = arith.constant 0 : index
    %c0_12 = arith.constant 0 : index
    %13 = vector.load %arg4[%c0_10, %c0_11, %c0_12] : memref<2x32x32xf32, #tpu.memory_space<vmem>>, vector<1x32x32xf32>
    %14 = vector.shape_cast %13 : vector<1x32x32xf32> to vector<32x32xf32>
    %cst_13 = arith.constant dense<0.000000e+00> : vector<16x32xf32>
    %15 = tpu.matmul %12, %14, %cst_13 {dimension_numbers = #tpu.dot_dimension_numbers<[1], [0], [0], [1], [0, 0, 1, 1], [], []>} : vector<16x32xf32>, vector<32x32xf32>, vector<16x32xf32> -> vector<16x32xf32>
    %c0_14 = arith.constant 0 : index
    %c0_15 = arith.constant 0 : index
    %c0_16 = arith.constant 0 : index
    %16 = vector.load %arg5[%c0_14, %c0_15, %c0_16] : memref<2x1x32xf32, #tpu.memory_space<vmem>>, vector<1x1x32xf32>
    %17 = vector.shape_cast %16 : vector<1x1x32xf32> to vector<1x32xf32>
    %18 = vector.broadcast %17 : vector<1x32xf32> to vector<16x32xf32>
    %19 = arith.addf %15, %18 : vector<16x32xf32>
    %c0_17 = arith.constant 0 : index
    %c0_18 = arith.constant 0 : index
    %c0_19 = arith.constant 0 : index
    %20 = vector.load %arg6[%c0_17, %c0_18, %c0_19] : memref<2x32x32xf32, #tpu.memory_space<vmem>>, vector<1x32x32xf32>
    %21 = vector.shape_cast %20 : vector<1x32x32xf32> to vector<32x32xf32>
    %cst_20 = arith.constant dense<0.000000e+00> : vector<16x32xf32>
    %22 = tpu.matmul %19, %21, %cst_20 {dimension_numbers = #tpu.dot_dimension_numbers<[1], [0], [0], [1], [0, 0, 1, 1], [], []>} : vector<16x32xf32>, vector<32x32xf32>, vector<16x32xf32> -> vector<16x32xf32>
    %c0_21 = arith.constant 0 : index
    %c0_22 = arith.constant 0 : index
    %c0_23 = arith.constant 0 : index
    %23 = vector.load %arg7[%c0_21, %c0_22, %c0_23] : memref<2x1x32xf32, #tpu.memory_space<vmem>>, vector<1x1x32xf32>
    %24 = vector.shape_cast %23 : vector<1x1x32xf32> to vector<1x32xf32>
    %25 = vector.broadcast %24 : vector<1x32xf32> to vector<16x32xf32>
    %26 = arith.addf %22, %25 : vector<16x32xf32>
    %27 = arith.addf %10, %26 : vector<16x32xf32>
    %c0_24 = arith.constant 0 : index
    %c0_25 = arith.constant 0 : index
    %c0_26 = arith.constant 0 : index
    %28 = vector.load %arg12[%c0_24, %c0_25, %c0_26] : memref<2x1x32xf32, #tpu.memory_space<vmem>>, vector<1x1x32xf32>
    %29 = vector.shape_cast %28 : vector<1x1x32xf32> to vector<1x32xf32>
    %c0_27 = arith.constant 0 : index
    %c0_28 = arith.constant 0 : index
    %c0_29 = arith.constant 0 : index
    %30 = vector.load %arg13[%c0_27, %c0_28, %c0_29] : memref<2x1x32xf32, #tpu.memory_space<vmem>>, vector<1x1x32xf32>
    %31 = vector.shape_cast %30 : vector<1x1x32xf32> to vector<1x32xf32>
    %cst_30 = arith.constant dense<0.000000e+00> : vector<16xf32>
    %32 = vector.multi_reduction <add>, %27, %cst_30 [1] : vector<16x32xf32> to vector<16xf32>
    %33 = vector.shape_cast %32 : vector<16xf32> to vector<16x1xf32>
    %cst_31 = arith.constant 3.200000e+01 : f32
    %34 = vector.broadcast %cst_31 : f32 to vector<16x1xf32>
    %35 = arith.divf %33, %34 : vector<16x1xf32>
    %36 = arith.mulf %27, %27 : vector<16x32xf32>
    %cst_32 = arith.constant dense<0.000000e+00> : vector<16xf32>
    %37 = vector.multi_reduction <add>, %36, %cst_32 [1] : vector<16x32xf32> to vector<16xf32>
    %38 = vector.shape_cast %37 : vector<16xf32> to vector<16x1xf32>
    %cst_33 = arith.constant 3.200000e+01 : f32
    %39 = vector.broadcast %cst_33 : f32 to vector<16x1xf32>
    %40 = arith.divf %38, %39 : vector<16x1xf32>
    %41 = arith.mulf %35, %35 : vector<16x1xf32>
    %42 = arith.subf %40, %41 : vector<16x1xf32>
    %43 = vector.broadcast %35 : vector<16x1xf32> to vector<16x32xf32>
    %44 = arith.subf %27, %43 : vector<16x32xf32>
    %cst_34 = arith.constant 9.99999974E-6 : f32
    %45 = vector.broadcast %cst_34 : f32 to vector<16x1xf32>
    %46 = arith.addf %42, %45 : vector<16x1xf32>
    %47 = math.rsqrt %46 : vector<16x1xf32>
    %48 = vector.broadcast %47 : vector<16x1xf32> to vector<16x32xf32>
    %49 = arith.mulf %44, %48 : vector<16x32xf32>
    %50 = vector.broadcast %29 : vector<1x32xf32> to vector<16x32xf32>
    %51 = arith.mulf %49, %50 : vector<16x32xf32>
    %52 = vector.broadcast %31 : vector<1x32xf32> to vector<16x32xf32>
    %53 = arith.addf %51, %52 : vector<16x32xf32>
    %c0_35 = arith.constant 0 : index
    %c0_36 = arith.constant 0 : index
    %c0_37 = arith.constant 0 : index
    %54 = vector.load %arg8[%c0_35, %c0_36, %c0_37] : memref<2x32x64xf32, #tpu.memory_space<vmem>>, vector<1x32x64xf32>
    %55 = vector.shape_cast %54 : vector<1x32x64xf32> to vector<32x64xf32>
    %cst_38 = arith.constant dense<0.000000e+00> : vector<16x64xf32>
    %56 = tpu.matmul %53, %55, %cst_38 {dimension_numbers = #tpu.dot_dimension_numbers<[1], [0], [0], [1], [0, 0, 1, 1], [], []>} : vector<16x32xf32>, vector<32x64xf32>, vector<16x64xf32> -> vector<16x64xf32>
    %c0_39 = arith.constant 0 : index
    %c0_40 = arith.constant 0 : index
    %c0_41 = arith.constant 0 : index
    %57 = vector.load %arg9[%c0_39, %c0_40, %c0_41] : memref<2x1x64xf32, #tpu.memory_space<vmem>>, vector<1x1x64xf32>
    %58 = vector.shape_cast %57 : vector<1x1x64xf32> to vector<1x64xf32>
    %59 = vector.broadcast %58 : vector<1x64xf32> to vector<16x64xf32>
    %60 = arith.addf %56, %59 : vector<16x64xf32>
    %cst_42 = arith.constant 0.000000e+00 : f32
    %61 = vector.broadcast %cst_42 : f32 to vector<16x64xf32>
    %62 = arith.maximumf %60, %61 : vector<16x64xf32>
    %c0_43 = arith.constant 0 : index
    %c0_44 = arith.constant 0 : index
    %c0_45 = arith.constant 0 : index
    %63 = vector.load %arg10[%c0_43, %c0_44, %c0_45] : memref<2x64x32xf32, #tpu.memory_space<vmem>>, vector<1x64x32xf32>
    %64 = vector.shape_cast %63 : vector<1x64x32xf32> to vector<64x32xf32>
    %cst_46 = arith.constant dense<0.000000e+00> : vector<16x32xf32>
    %65 = tpu.matmul %62, %64, %cst_46 {dimension_numbers = #tpu.dot_dimension_numbers<[1], [0], [0], [1], [0, 0, 1, 1], [], []>} : vector<16x64xf32>, vector<64x32xf32>, vector<16x32xf32> -> vector<16x32xf32>
    %c0_47 = arith.constant 0 : index
    %c0_48 = arith.constant 0 : index
    %c0_49 = arith.constant 0 : index
    %66 = vector.load %arg11[%c0_47, %c0_48, %c0_49] : memref<2x1x32xf32, #tpu.memory_space<vmem>>, vector<1x1x32xf32>
    %67 = vector.shape_cast %66 : vector<1x1x32xf32> to vector<1x32xf32>
    %68 = vector.broadcast %67 : vector<1x32xf32> to vector<16x32xf32>
    %69 = arith.addf %65, %68 : vector<16x32xf32>
    %70 = arith.addf %53, %69 : vector<16x32xf32>
    %c0_50 = arith.constant 0 : index
    %c0_51 = arith.constant 0 : index
    %c0_52 = arith.constant 0 : index
    %71 = vector.load %arg14[%c0_50, %c0_51, %c0_52] : memref<2x1x32xf32, #tpu.memory_space<vmem>>, vector<1x1x32xf32>
    %72 = vector.shape_cast %71 : vector<1x1x32xf32> to vector<1x32xf32>
    %c0_53 = arith.constant 0 : index
    %c0_54 = arith.constant 0 : index
    %c0_55 = arith.constant 0 : index
    %73 = vector.load %arg15[%c0_53, %c0_54, %c0_55] : memref<2x1x32xf32, #tpu.memory_space<vmem>>, vector<1x1x32xf32>
    %74 = vector.shape_cast %73 : vector<1x1x32xf32> to vector<1x32xf32>
    %cst_56 = arith.constant dense<0.000000e+00> : vector<16xf32>
    %75 = vector.multi_reduction <add>, %70, %cst_56 [1] : vector<16x32xf32> to vector<16xf32>
    %76 = vector.shape_cast %75 : vector<16xf32> to vector<16x1xf32>
    %cst_57 = arith.constant 3.200000e+01 : f32
    %77 = vector.broadcast %cst_57 : f32 to vector<16x1xf32>
    %78 = arith.divf %76, %77 : vector<16x1xf32>
    %79 = arith.mulf %70, %70 : vector<16x32xf32>
    %cst_58 = arith.constant dense<0.000000e+00> : vector<16xf32>
    %80 = vector.multi_reduction <add>, %79, %cst_58 [1] : vector<16x32xf32> to vector<16xf32>
    %81 = vector.shape_cast %80 : vector<16xf32> to vector<16x1xf32>
    %cst_59 = arith.constant 3.200000e+01 : f32
    %82 = vector.broadcast %cst_59 : f32 to vector<16x1xf32>
    %83 = arith.divf %81, %82 : vector<16x1xf32>
    %84 = arith.mulf %78, %78 : vector<16x1xf32>
    %85 = arith.subf %83, %84 : vector<16x1xf32>
    %86 = vector.broadcast %78 : vector<16x1xf32> to vector<16x32xf32>
    %87 = arith.subf %70, %86 : vector<16x32xf32>
    %cst_60 = arith.constant 9.99999974E-6 : f32
    %88 = vector.broadcast %cst_60 : f32 to vector<16x1xf32>
    %89 = arith.addf %85, %88 : vector<16x1xf32>
    %90 = math.rsqrt %89 : vector<16x1xf32>
    %91 = vector.broadcast %90 : vector<16x1xf32> to vector<16x32xf32>
    %92 = arith.mulf %87, %91 : vector<16x32xf32>
    %93 = vector.broadcast %72 : vector<1x32xf32> to vector<16x32xf32>
    %94 = arith.mulf %92, %93 : vector<16x32xf32>
    %95 = vector.broadcast %74 : vector<1x32xf32> to vector<16x32xf32>
    %96 = arith.addf %94, %95 : vector<16x32xf32>
    %cst_61 = arith.constant dense<0.000000e+00> : vector<16x32xf32>
    %97 = tpu.matmul %11, %96, %cst_61 {dimension_numbers = #tpu.dot_dimension_numbers<[1], [0], [0], [1], [0, 0, 1, 1], [], []>} : vector<16x16xf32>, vector<16x32xf32>, vector<16x32xf32> -> vector<16x32xf32>
    %c1 = arith.constant 1 : index
    %c0_62 = arith.constant 0 : index
    %c0_63 = arith.constant 0 : index
    %98 = vector.load %arg4[%c1, %c0_62, %c0_63] : memref<2x32x32xf32, #tpu.memory_space<vmem>>, vector<1x32x32xf32>
    %99 = vector.shape_cast %98 : vector<1x32x32xf32> to vector<32x32xf32>
    %cst_64 = arith.constant dense<0.000000e+00> : vector<16x32xf32>
    %100 = tpu.matmul %97, %99, %cst_64 {dimension_numbers = #tpu.dot_dimension_numbers<[1], [0], [0], [1], [0, 0, 1, 1], [], []>} : vector<16x32xf32>, vector<32x32xf32>, vector<16x32xf32> -> vector<16x32xf32>
    %c1_65 = arith.constant 1 : index
    %c0_66 = arith.constant 0 : index
    %c0_67 = arith.constant 0 : index
    %101 = vector.load %arg5[%c1_65, %c0_66, %c0_67] : memref<2x1x32xf32, #tpu.memory_space<vmem>>, vector<1x1x32xf32>
    %102 = vector.shape_cast %101 : vector<1x1x32xf32> to vector<1x32xf32>
    %103 = vector.broadcast %102 : vector<1x32xf32> to vector<16x32xf32>
    %104 = arith.addf %100, %103 : vector<16x32xf32>
    %c1_68 = arith.constant 1 : index
    %c0_69 = arith.constant 0 : index
    %c0_70 = arith.constant 0 : index
    %105 = vector.load %arg6[%c1_68, %c0_69, %c0_70] : memref<2x32x32xf32, #tpu.memory_space<vmem>>, vector<1x32x32xf32>
    %106 = vector.shape_cast %105 : vector<1x32x32xf32> to vector<32x32xf32>
    %cst_71 = arith.constant dense<0.000000e+00> : vector<16x32xf32>
    %107 = tpu.matmul %104, %106, %cst_71 {dimension_numbers = #tpu.dot_dimension_numbers<[1], [0], [0], [1], [0, 0, 1, 1], [], []>} : vector<16x32xf32>, vector<32x32xf32>, vector<16x32xf32> -> vector<16x32xf32>
    %c1_72 = arith.constant 1 : index
    %c0_73 = arith.constant 0 : index
    %c0_74 = arith.constant 0 : index
    %108 = vector.load %arg7[%c1_72, %c0_73, %c0_74] : memref<2x1x32xf32, #tpu.memory_space<vmem>>, vector<1x1x32xf32>
    %109 = vector.shape_cast %108 : vector<1x1x32xf32> to vector<1x32xf32>
    %110 = vector.broadcast %109 : vector<1x32xf32> to vector<16x32xf32>
    %111 = arith.addf %107, %110 : vector<16x32xf32>
    %112 = arith.addf %96, %111 : vector<16x32xf32>
    %c1_75 = arith.constant 1 : index
    %c0_76 = arith.constant 0 : index
    %c0_77 = arith.constant 0 : index
    %113 = vector.load %arg12[%c1_75, %c0_76, %c0_77] : memref<2x1x32xf32, #tpu.memory_space<vmem>>, vector<1x1x32xf32>
    %114 = vector.shape_cast %113 : vector<1x1x32xf32> to vector<1x32xf32>
    %c1_78 = arith.constant 1 : index
    %c0_79 = arith.constant 0 : index
    %c0_80 = arith.constant 0 : index
    %115 = vector.load %arg13[%c1_78, %c0_79, %c0_80] : memref<2x1x32xf32, #tpu.memory_space<vmem>>, vector<1x1x32xf32>
    %116 = vector.shape_cast %115 : vector<1x1x32xf32> to vector<1x32xf32>
    %cst_81 = arith.constant dense<0.000000e+00> : vector<16xf32>
    %117 = vector.multi_reduction <add>, %112, %cst_81 [1] : vector<16x32xf32> to vector<16xf32>
    %118 = vector.shape_cast %117 : vector<16xf32> to vector<16x1xf32>
    %cst_82 = arith.constant 3.200000e+01 : f32
    %119 = vector.broadcast %cst_82 : f32 to vector<16x1xf32>
    %120 = arith.divf %118, %119 : vector<16x1xf32>
    %121 = arith.mulf %112, %112 : vector<16x32xf32>
    %cst_83 = arith.constant dense<0.000000e+00> : vector<16xf32>
    %122 = vector.multi_reduction <add>, %121, %cst_83 [1] : vector<16x32xf32> to vector<16xf32>
    %123 = vector.shape_cast %122 : vector<16xf32> to vector<16x1xf32>
    %cst_84 = arith.constant 3.200000e+01 : f32
    %124 = vector.broadcast %cst_84 : f32 to vector<16x1xf32>
    %125 = arith.divf %123, %124 : vector<16x1xf32>
    %126 = arith.mulf %120, %120 : vector<16x1xf32>
    %127 = arith.subf %125, %126 : vector<16x1xf32>
    %128 = vector.broadcast %120 : vector<16x1xf32> to vector<16x32xf32>
    %129 = arith.subf %112, %128 : vector<16x32xf32>
    %cst_85 = arith.constant 9.99999974E-6 : f32
    %130 = vector.broadcast %cst_85 : f32 to vector<16x1xf32>
    %131 = arith.addf %127, %130 : vector<16x1xf32>
    %132 = math.rsqrt %131 : vector<16x1xf32>
    %133 = vector.broadcast %132 : vector<16x1xf32> to vector<16x32xf32>
    %134 = arith.mulf %129, %133 : vector<16x32xf32>
    %135 = vector.broadcast %114 : vector<1x32xf32> to vector<16x32xf32>
    %136 = arith.mulf %134, %135 : vector<16x32xf32>
    %137 = vector.broadcast %116 : vector<1x32xf32> to vector<16x32xf32>
    %138 = arith.addf %136, %137 : vector<16x32xf32>
    %c1_86 = arith.constant 1 : index
    %c0_87 = arith.constant 0 : index
    %c0_88 = arith.constant 0 : index
    %139 = vector.load %arg8[%c1_86, %c0_87, %c0_88] : memref<2x32x64xf32, #tpu.memory_space<vmem>>, vector<1x32x64xf32>
    %140 = vector.shape_cast %139 : vector<1x32x64xf32> to vector<32x64xf32>
    %cst_89 = arith.constant dense<0.000000e+00> : vector<16x64xf32>
    %141 = tpu.matmul %138, %140, %cst_89 {dimension_numbers = #tpu.dot_dimension_numbers<[1], [0], [0], [1], [0, 0, 1, 1], [], []>} : vector<16x32xf32>, vector<32x64xf32>, vector<16x64xf32> -> vector<16x64xf32>
    %c1_90 = arith.constant 1 : index
    %c0_91 = arith.constant 0 : index
    %c0_92 = arith.constant 0 : index
    %142 = vector.load %arg9[%c1_90, %c0_91, %c0_92] : memref<2x1x64xf32, #tpu.memory_space<vmem>>, vector<1x1x64xf32>
    %143 = vector.shape_cast %142 : vector<1x1x64xf32> to vector<1x64xf32>
    %144 = vector.broadcast %143 : vector<1x64xf32> to vector<16x64xf32>
    %145 = arith.addf %141, %144 : vector<16x64xf32>
    %cst_93 = arith.constant 0.000000e+00 : f32
    %146 = vector.broadcast %cst_93 : f32 to vector<16x64xf32>
    %147 = arith.maximumf %145, %146 : vector<16x64xf32>
    %c1_94 = arith.constant 1 : index
    %c0_95 = arith.constant 0 : index
    %c0_96 = arith.constant 0 : index
    %148 = vector.load %arg10[%c1_94, %c0_95, %c0_96] : memref<2x64x32xf32, #tpu.memory_space<vmem>>, vector<1x64x32xf32>
    %149 = vector.shape_cast %148 : vector<1x64x32xf32> to vector<64x32xf32>
    %cst_97 = arith.constant dense<0.000000e+00> : vector<16x32xf32>
    %150 = tpu.matmul %147, %149, %cst_97 {dimension_numbers = #tpu.dot_dimension_numbers<[1], [0], [0], [1], [0, 0, 1, 1], [], []>} : vector<16x64xf32>, vector<64x32xf32>, vector<16x32xf32> -> vector<16x32xf32>
    %c1_98 = arith.constant 1 : index
    %c0_99 = arith.constant 0 : index
    %c0_100 = arith.constant 0 : index
    %151 = vector.load %arg11[%c1_98, %c0_99, %c0_100] : memref<2x1x32xf32, #tpu.memory_space<vmem>>, vector<1x1x32xf32>
    %152 = vector.shape_cast %151 : vector<1x1x32xf32> to vector<1x32xf32>
    %153 = vector.broadcast %152 : vector<1x32xf32> to vector<16x32xf32>
    %154 = arith.addf %150, %153 : vector<16x32xf32>
    %155 = arith.addf %138, %154 : vector<16x32xf32>
    %c1_101 = arith.constant 1 : index
    %c0_102 = arith.constant 0 : index
    %c0_103 = arith.constant 0 : index
    %156 = vector.load %arg14[%c1_101, %c0_102, %c0_103] : memref<2x1x32xf32, #tpu.memory_space<vmem>>, vector<1x1x32xf32>
    %157 = vector.shape_cast %156 : vector<1x1x32xf32> to vector<1x32xf32>
    %c1_104 = arith.constant 1 : index
    %c0_105 = arith.constant 0 : index
    %c0_106 = arith.constant 0 : index
    %158 = vector.load %arg15[%c1_104, %c0_105, %c0_106] : memref<2x1x32xf32, #tpu.memory_space<vmem>>, vector<1x1x32xf32>
    %159 = vector.shape_cast %158 : vector<1x1x32xf32> to vector<1x32xf32>
    %cst_107 = arith.constant dense<0.000000e+00> : vector<16xf32>
    %160 = vector.multi_reduction <add>, %155, %cst_107 [1] : vector<16x32xf32> to vector<16xf32>
    %161 = vector.shape_cast %160 : vector<16xf32> to vector<16x1xf32>
    %cst_108 = arith.constant 3.200000e+01 : f32
    %162 = vector.broadcast %cst_108 : f32 to vector<16x1xf32>
    %163 = arith.divf %161, %162 : vector<16x1xf32>
    %164 = arith.mulf %155, %155 : vector<16x32xf32>
    %cst_109 = arith.constant dense<0.000000e+00> : vector<16xf32>
    %165 = vector.multi_reduction <add>, %164, %cst_109 [1] : vector<16x32xf32> to vector<16xf32>
    %166 = vector.shape_cast %165 : vector<16xf32> to vector<16x1xf32>
    %cst_110 = arith.constant 3.200000e+01 : f32
    %167 = vector.broadcast %cst_110 : f32 to vector<16x1xf32>
    %168 = arith.divf %166, %167 : vector<16x1xf32>
    %169 = arith.mulf %163, %163 : vector<16x1xf32>
    %170 = arith.subf %168, %169 : vector<16x1xf32>
    %171 = vector.broadcast %163 : vector<16x1xf32> to vector<16x32xf32>
    %172 = arith.subf %155, %171 : vector<16x32xf32>
    %cst_111 = arith.constant 9.99999974E-6 : f32
    %173 = vector.broadcast %cst_111 : f32 to vector<16x1xf32>
    %174 = arith.addf %170, %173 : vector<16x1xf32>
    %175 = math.rsqrt %174 : vector<16x1xf32>
    %176 = vector.broadcast %175 : vector<16x1xf32> to vector<16x32xf32>
    %177 = arith.mulf %172, %176 : vector<16x32xf32>
    %178 = vector.broadcast %157 : vector<1x32xf32> to vector<16x32xf32>
    %179 = arith.mulf %177, %178 : vector<16x32xf32>
    %180 = vector.broadcast %159 : vector<1x32xf32> to vector<16x32xf32>
    %181 = arith.addf %179, %180 : vector<16x32xf32>
    %c0_112 = arith.constant 0 : index
    %c0_113 = arith.constant 0 : index
    %182 = vector.load %arg16[%c0_112, %c0_113] : memref<1x32xf32, #tpu.memory_space<vmem>>, vector<1x32xf32>
    %c0_114 = arith.constant 0 : index
    %c0_115 = arith.constant 0 : index
    %183 = vector.load %arg17[%c0_114, %c0_115] : memref<1x32xf32, #tpu.memory_space<vmem>>, vector<1x32xf32>
    %cst_116 = arith.constant dense<0.000000e+00> : vector<16xf32>
    %184 = vector.multi_reduction <add>, %181, %cst_116 [1] : vector<16x32xf32> to vector<16xf32>
    %185 = vector.shape_cast %184 : vector<16xf32> to vector<16x1xf32>
    %cst_117 = arith.constant 3.200000e+01 : f32
    %186 = vector.broadcast %cst_117 : f32 to vector<16x1xf32>
    %187 = arith.divf %185, %186 : vector<16x1xf32>
    %188 = arith.mulf %181, %181 : vector<16x32xf32>
    %cst_118 = arith.constant dense<0.000000e+00> : vector<16xf32>
    %189 = vector.multi_reduction <add>, %188, %cst_118 [1] : vector<16x32xf32> to vector<16xf32>
    %190 = vector.shape_cast %189 : vector<16xf32> to vector<16x1xf32>
    %cst_119 = arith.constant 3.200000e+01 : f32
    %191 = vector.broadcast %cst_119 : f32 to vector<16x1xf32>
    %192 = arith.divf %190, %191 : vector<16x1xf32>
    %193 = arith.mulf %187, %187 : vector<16x1xf32>
    %194 = arith.subf %192, %193 : vector<16x1xf32>
    %195 = vector.broadcast %187 : vector<16x1xf32> to vector<16x32xf32>
    %196 = arith.subf %181, %195 : vector<16x32xf32>
    %cst_120 = arith.constant 9.99999974E-6 : f32
    %197 = vector.broadcast %cst_120 : f32 to vector<16x1xf32>
    %198 = arith.addf %194, %197 : vector<16x1xf32>
    %199 = math.rsqrt %198 : vector<16x1xf32>
    %200 = vector.broadcast %199 : vector<16x1xf32> to vector<16x32xf32>
    %201 = arith.mulf %196, %200 : vector<16x32xf32>
    %202 = vector.broadcast %182 : vector<1x32xf32> to vector<16x32xf32>
    %203 = arith.mulf %201, %202 : vector<16x32xf32>
    %204 = vector.broadcast %183 : vector<1x32xf32> to vector<16x32xf32>
    %205 = arith.addf %203, %204 : vector<16x32xf32>
    %c0_121 = arith.constant 0 : index
    %c0_122 = arith.constant 0 : index
    %206 = vector.load %arg18[%c0_121, %c0_122] : memref<16x32xf32, #tpu.memory_space<vmem>>, vector<16x32xf32>
    tpu.vector_store %arg18[%c0_121, %c0_122], %205 {strides = array<i32>} : memref<16x32xf32, #tpu.memory_space<vmem>>, vector<16x32xf32>,
    return
  }
}

</mosaic_0001>

<bundles_post_ra>
// kernel: encoder_forward.1
= control target key start
LH: loop header
LB: loop body
LE: loop exit
PB: predicated region body
PF: predicated region fallthrough
CT: control target
= control target key end

     0   :  { %s1374_s0 = inlined_call_operand.vmem [shape: s32[16,1], index: 0, kind: input, shape index: {}]   ;;  %s1375_s1 = inlined_call_operand.vmem [shape: f32[16,32], index: 1, kind: input, shape index: {}]   ;;  %s1376_s2 = inlined_call_operand.vmem [shape: f32[16,16], index: 2, kind: input, shape index: {}]   ;;  %s1377_s3 = inlined_call_operand.vmem [shape: f32[50,32], index: 3, kind: input, shape index: {}]   ;;  %s1378_s4 = inlined_call_operand.vmem [shape: f32[2,32,32], index: 4, kind: input, shape index: {}]   ;;  %s1379_s5 = inlined_call_operand.vmem [shape: f32[2,1,32], index: 5, kind: input, shape index: {}]   ;;  %s1380_s6 = inlined_call_operand.vmem [shape: f32[2,32,32], index: 6, kind: input, shape index: {}]   ;;  %s1381_s7 = inlined_call_operand.vmem [shape: f32[2,1,32], index: 7, kind: input, shape index: {}]   ;;  %s1382_s8 = inlined_call_operand.vmem [shape: f32[2,32,64], index: 8, kind: input, shape index: {}]   ;;  %s1383_s9 = inlined_call_operand.vmem [shape: f32[2,1,64], index: 9, kind: input, shape index: {}]   ;;  %s1384_s10 = inlined_call_operand.vmem [shape: f32[2,64,32], index: 10, kind: input, shape index: {}]   ;;  %s1385_s11 = inlined_call_operand.vmem [shape: f32[2,1,32], index: 11, kind: input, shape index: {}]   ;;  %s1386_s12 = inlined_call_operand.vmem [shape: f32[2,1,32], index: 12, kind: input, shape index: {}]   ;;  %s1387_s13 = inlined_call_operand.vmem [shape: f32[2,1,32], index: 13, kind: input, shape index: {}]   ;;  %s1388_s14 = inlined_call_operand.vmem [shape: f32[2,1,32], index: 14, kind: input, shape index: {}]   ;;  %s1389_s15 = inlined_call_operand.vmem [shape: f32[2,1,32], index: 15, kind: input, shape index: {}]   ;;  %s1390_s16 = inlined_call_operand.vmem [shape: f32[1,32], index: 16, kind: input, shape index: {}]   ;;  %s1391_s17 = inlined_call_operand.vmem [shape: f32[1,32], index: 17, kind: input, shape index: {}]   ;;  %s1392_s18 = inlined_call_operand.hbm [shape: f32[16,32], index: 18, kind: output, shape index: {}]  }
   0x1   :  { %1396 = sst [smem:[#allocation5_spill]] %s1374_s0 }
   0x2   :  { %1397 = sst [smem:[#allocation6_spill]] %s1375_s1 }
   0x3   :  { %1398 = sst [smem:[#allocation7_spill]] %s1376_s2 }
   0x4   :  { %s1399_s29 = sld [smem:[#allocation5_spill]]  ;;  %v80_v1 = vld [vmem:[%s1377_s3 + $0x30] sm:$0x3]  ;;  %vm90_vm0 = vcmask 1041408   ;;  %v961_v2 = vmov 0   ;;  %v79_v3 = vld [vmem:[%s1377_s3 + $0x28] sm:$0xff] }
   0x5   :  { %894 = vset.pattern.permute.xlu0 %v961_v2  ;;  %829 = vmatpush.msk.msra.mxu0 %vm90_vm0, %v80_v1  ;;  %v78_v4 = vld [vmem:[%s1377_s3 + $0x20] sm:$0xff]  ;;  %v77_v5 = vld [vmem:[%s1377_s3 + $0x18] sm:$0xff]  ;;  %v76_v6 = vld [vmem:[%s1377_s3 + $0x10] sm:$0xff] }
   0x6   :  { %v75_v8 = vld [vmem:[%s1377_s3 + $0x8] sm:$0xff] }
   0x7   :  { %104 = vmatpush.msra.mxu0 %v79_v3 }
   0x9   :  { %105 = vmatpush.msra.mxu0 %v78_v4 }
   0xa   :  { %v60_v0 = vld [vmem:[%s1399_s29] sm:$0xff]  ;;  %v61_v7 = vld [vmem:[%s1399_s29 + $0x8] sm:$0xff] }
   0xb   :  { %65 = vperm.xlu0 %894, %v60_v0   ;;  %106 = vmatpush.msra.mxu0 %v77_v5 }
   0xc   :  { %23 = vsyncpa [#allocation3], 0  ;;  %v74_v9 = vld [vmem:[%s1377_s3] sm:$0xff]  ;;  %v62_v10 = vlaneseq  ;;  %vm83_vm1 = vcmask 408576   ;;  %v962_v13 = vmov 0.0   ;;  %v152_v17 = vld [vmem:[%s1378_s4 + $0x18] sm:$0xff] }
   0xd   :  { %107 = vmatpush.msra.mxu0 %v76_v6  ;;  %v151_v18 = vld [vmem:[%s1378_s4 + $0x10] sm:$0xff]  ;;  %176 = vmatpush.msra.mxu2 %v152_v17  ;;  %v150_v19 = vld [vmem:[%s1378_s4 + $0x8] sm:$0xff]  ;;  %s1400_s23 = sld [smem:[#allocation6_spill]]  ;;  %vm119_vm4 = vcmask 130048   ;;  %v149_v28 = vld [vmem:[%s1378_s4] sm:$0xff]  ;;  %vm157_vm5 = vcmask 261120  }
   0xe   :  { %v63_v11 = vand.u32 127, %v62_v10  ;;  %s1401_s28 = sld [smem:[#allocation7_spill]]  ;;  %v190_v29 = vld [vmem:[%s1380_s6 + $0x18] sm:$0xff]  ;;  %v189_v30 = vld [vmem:[%s1380_s6 + $0x10] sm:$0xff]  ;;  %v188_v33 = vld [vmem:[%s1380_s6 + $0x8] sm:$0xff]  ;;  %v963_v53 = vmov 32.0  }
   0xf   :  { %108 = vmatpush.msra.mxu0 %v75_v8  ;;  %177 = vmatpush.msra.mxu2 %v151_v18  ;;  %v187_v34 = vld [vmem:[%s1380_s6] sm:$0xff]  ;;  %913 = vrcp.f32 %v963_v53  ;;  %v296_v59 = vld [vmem:[%s1382_s8 + $0x18] sm:$0xff]  ;;  %v295_v61 = vld [vmem:[%s1382_s8 + $0x10] sm:$0xff]  ;;  %vm344_vm13 = vcmask 523264   ;;  %s966_s29 = smov 8  }
  0x10   :  { %213 = vmatpush.msra.mxu3 %v190_v29  ;;  %v895_v35 = vld [vmem:[%s1379_s5] ss:$0 sm:$0xff]  ;;  %v294_v63 = vld [vmem:[%s1382_s8 + $0x8] sm:$0xff]  ;;  %v338_v10 = vld [vmem:[%s1384_s10 + $0x30] sm:$0xff] }
  0x11   :  { %109 = vmatpush.msra.mxu0 %v74_v9  ;;  %178 = vmatpush.msra.mxu2 %v150_v19  ;;  %v896_v40 = vld [vmem:[%s1381_s7] ss:$0 sm:$0xff]  ;;  %v339_v9 = vld [vmem:[%s1384_s10 + $0x38] sm:$0xff] }
  0x12   :  { %214 = vmatpush.msra.mxu3 %v189_v30  ;;  %v293_v1 = vld [vmem:[%s1382_s8] sm:$0xff]  ;;  %v335_v19 = vld [vmem:[%s1384_s10 + $0x18] sm:$0xff] }
  0x13   :  { %68 = vperm.xlu0 %894, %v61_v7   ;;  %v82_v21 = vld [vmem:[%s1400_s23 + $0x8] sm:$0xff]  ;;  %v81_v22 = vld [vmem:[%s1400_s23] sm:$0xff]  ;;  %179 = vmatpush.msra.mxu2 %v149_v28 }
  0x14   :  { %v1107_v26 = vld [vmem:[%s1401_s28] sm:$0xff]  ;;  %v1114_v27 = vld [vmem:[%s1401_s28 + $0x8] sm:$0xff]  ;;  %215 = vmatpush.msra.mxu3 %v188_v33  ;;  %359 = vmatpush.msrb.mxu0 %v339_v9 }
  0x15   :  { %v914_v54 = vpop.eup %913  ;;  %880 = vmatpush.msrb.mxu2 %v339_v9  ;;  %v897_v30 = vld [vmem:[%s1386_s12] ss:$0 sm:$0xff] }
  0x16   :  { %216 = vmatpush.msra.mxu3 %v187_v34  ;;  %v235_v55 = vmul.f32 32.0, %v914_v54  ;;  %vm239_vm6 = vweird.f32 %v914_v54  ;;  %360 = vmatpush.msrb.mxu0 %v338_v10  ;;  %v898_v34 = vld [vmem:[%s1387_s13] ss:$0 sm:$0xff] }
  0x17   :  { %881 = vmatpush.msrb.mxu2 %v338_v10 }
  0x18   :  { %v236_v56 = vsub.f32 1.0, %v235_v55  ;;  %v900_v55 = vld [vmem:[%s1385_s11] ss:$0 sm:$0xff] }
  0x1a   :  { %v237_v57 = vmul.f32 %v914_v54, %v236_v56 }
  0x1c   :  { %v238_v58 = vadd.f32 %v914_v54, %v237_v57 }
  0x1e   :  { %v1163_v62 = vsel %vm239_vm6, %v914_v54, %v238_v58 }
  0x7d   :  { %v66_v12 = vpop.permute.xlu0 %65 }
  0x7e   :  { %vm70_vm2 = vcmp.eq.s32.totalorder %v66_v12, %v63_v11 }
  0x7f   :  { %v72_v14 = vsel %vm70_vm2, 1.0, %v962_v13 }
  0x80   :  { %830 = vmatmul.msk.f32.vlgmr.msra.gmra.mxu0 %vm83_vm1, %v72_v14  ;;  %v337_v14 = vld [vmem:[%s1384_s10 + $0x28] sm:$0xff] }
  0x81   :  { %361 = vmatpush.msrb.mxu0 %v337_v14  ;;  %882 = vmatpush.msrb.mxu2 %v337_v14 }
  0x85   :  { %v69_v15 = vpop.permute.xlu0 %68 }
  0x86   :  { %vm71_vm3 = vcmp.eq.s32.totalorder %v69_v15, %v63_v11 }
  0x87   :  { %v73_v16 = vsel %vm71_vm3, 1.0, %v962_v13 }
  0x88   :  { %831 = vmatmul.msk.f32.gmra.mxu0 %vm83_vm1, %v73_v16  ;;  %v336_v16 = vld [vmem:[%s1384_s10 + $0x20] sm:$0xff] }
  0x89   :  { %362 = vmatpush.msrb.mxu0 %v336_v16  ;;  %883 = vmatpush.msrb.mxu2 %v336_v16 }
  0x8b   :  { %363 = vmatpush.msrb.mxu0 %v335_v19  ;;  %884 = vmatpush.msrb.mxu2 %v335_v19 }
  0xfd   :  { %v111_v20 = vpop.f32.mrf.mxu0 }
  0xfe   :  { %v112_v25 = vadd.f32 %v111_v20, %v81_v22 }
 0x105   :  { %v114_v23 = vpop.f32.mrf.mxu0 }
 0x106   :  { %v115_v24 = vadd.f32 %v114_v23, %v82_v21 }
 0x108   :  { %140 = vmatpush.msra.mxu1 %v115_v24 }
 0x10a   :  { %141 = vmatpush.msra.mxu1 %v112_v25 }
 0x10b   :  { %832 = vmatmul.msk.f32.vlgmr.msra.gmra.mxu1 %vm119_vm4, %v1107_v26 }
 0x10c   :  { %319 = vmatpush.msrb.mxu1 %v296_v59 }
 0x10e   :  { %320 = vmatpush.msrb.mxu1 %v295_v61 }
 0x110   :  { %321 = vmatpush.msrb.mxu1 %v294_v63 }
 0x112   :  { %322 = vmatpush.msrb.mxu1 %v293_v1 }
 0x113   :  { %833 = vmatmul.msk.f32.gmra.mxu1 %vm119_vm4, %v1114_v27 }
 0x188   :  { %v143_v31 = vpop.f32.mrf.mxu1 }
 0x189   :  { %834 = vmatmul.msk.f32.vlgmr.msra.gmra.mxu2 %vm157_vm5, %v143_v31 }
 0x190   :  { %v146_v32 = vpop.f32.mrf.mxu1 }
 0x191   :  { %835 = vmatmul.msk.f32.gmra.mxu2 %vm157_vm5, %v146_v32 }
 0x20c   :  { %v181_v36 = vpop.f32.mrf.mxu2 }
 0x20d   :  { %v182_v37 = vadd.f32 %v895_v35, %v181_v36 }
 0x20f   :  { %836 = vmatmul.msk.f32.vlgmr.msra.gmra.mxu3 %vm157_vm5, %v182_v37 }
 0x214   :  { %v184_v38 = vpop.f32.mrf.mxu2 }
 0x215   :  { %v185_v39 = vadd.f32 %v895_v35, %v184_v38 }
 0x217   :  { %837 = vmatmul.msk.f32.gmra.mxu3 %vm157_vm5, %v185_v39 }
 0x292   :  { %v218_v41 = vpop.f32.mrf.mxu3 }
 0x293   :  { %v219_v42 = vadd.f32 %v896_v40, %v218_v41 }
 0x295   :  { %v1143_v43 = vadd.f32 %v219_v42, %v112_v25 }
 0x297   :  { %v228_v44 = vsel %vm157_vm5, %v1143_v43, 0.0  ;;  %v243_v47 = vmul.f32 %v1143_v43, %v1143_v43 }
 0x298   :  { %229 = vadd.xlane.f32.xlu1 %v228_v44 }
 0x299   :  { %v245_v49 = vsel %vm157_vm5, %v243_v47, 0.0  ;;  %v332_v47 = vld [vmem:[%s1384_s10] sm:$0xff] }
 0x29a   :  { %v221_v45 = vpop.f32.mrf.mxu3 }
 0x29b   :  { %v222_v46 = vadd.f32 %v896_v40, %v221_v45  ;;  %v334_v45 = vld [vmem:[%s1384_s10 + $0x10] sm:$0xff] }
 0x29c   :  { %364 = vmatpush.msrb.mxu0 %v334_v45  ;;  %885 = vmatpush.msrb.mxu2 %v334_v45 }
 0x29d   :  { %v1149_v48 = vadd.f32 %v222_v46, %v115_v24  ;;  %v333_v46 = vld [vmem:[%s1384_s10 + $0x8] sm:$0xff] }
 0x29e   :  { %365 = vmatpush.msrb.mxu0 %v333_v46  ;;  %886 = vmatpush.msrb.mxu2 %v333_v46 }
 0x29f   :  { %v231_v50 = vsel %vm157_vm5, %v1149_v48, 0.0  ;;  %v244_v51 = vmul.f32 %v1149_v48, %v1149_v48 }
 0x2a0   :  { %246 = vadd.xlane.f32.xlu1 %v245_v49  ;;  %232 = vadd.xlane.f32.xlu2 %v231_v50 }
 0x2a1   :  { %v248_v52 = vsel %vm157_vm5, %v244_v51, 0.0  ;;  %366 = vmatpush.msrb.mxu0 %v332_v47  ;;  %887 = vmatpush.msrb.mxu2 %v332_v47 }
 0x2a8   :  { %249 = vadd.xlane.f32.xlu2 %v248_v52 }
 0x30b   :  { %v230_v60 = vpop.xlane.xlu1 %229 }
 0x30c   :  { %v241_v0 = vmul.f32 %v1163_v62, %v230_v60 }
 0x30e   :  { %v253_v4 = vmul.f32 %v241_v0, %v241_v0  ;;  %v257_v29 = vsub.f32 %v1143_v43, %v241_v0 }
 0x313   :  { %v247_v2 = vpop.xlane.xlu1 %246  ;;  %v233_v3 = vpop.xlane.xlu2 %232 }
 0x314   :  { %v251_v5 = vmul.f32 %v247_v2, %v1163_v62  ;;  %v242_v8 = vmul.f32 %v1163_v62, %v233_v3 }
 0x316   :  { %v255_v6 = vsub.f32 %v251_v5, %v253_v4  ;;  %v254_v12 = vmul.f32 %v242_v8, %v242_v8  ;;  %v258_v40 = vsub.f32 %v1149_v48, %v242_v8  ;;  %v899_v48 = vld [vmem:[%s1383_s9] ss:$0 sm:$0xff] }
 0x318   :  { %v259_v7 = vadd.f32 1e-05, %v255_v6 }
 0x31a   :  { %915 = vrsqrt.f32 %v259_v7  ;;  %vm267_vm8 = vweird.f32 %v259_v7 }
 0x31b   :  { %v250_v11 = vpop.xlane.xlu2 %249 }
 0x31c   :  { %v252_v13 = vmul.f32 %v250_v11, %v1163_v62 }
 0x31e   :  { %v256_v15 = vsub.f32 %v252_v13, %v254_v12 }
 0x320   :  { %v916_v17 = vpop.eup %915  ;;  %v260_v18 = vadd.f32 1e-05, %v256_v15 }
 0x321   :  { %v262_v20 = vmul.f32 %v916_v17, %v259_v7  ;;  %vm268_vm7 = vweird.f32 %v916_v17 }
 0x322   :  { %917 = vrsqrt.f32 %v260_v18  ;;  %vm269_vm9 = vmor %vm267_vm8, %vm268_vm7  ;;  %vm277_vm11 = vweird.f32 %v260_v18 }
 0x323   :  { %v263_v21 = vmul.f32 %v916_v17, %v262_v20 }
 0x325   :  { %v264_v22 = vmul.f32 0.5, %v263_v21 }
 0x327   :  { %v265_v23 = vsub.f32 1.5, %v264_v22 }
 0x328   :  { %v918_v24 = vpop.eup %917 }
 0x329   :  { %v266_v25 = vmul.f32 %v916_v17, %v265_v23  ;;  %v272_v28 = vmul.f32 %v918_v24, %v260_v18  ;;  %vm278_vm10 = vweird.f32 %v918_v24  ;;  %v847_v23 = vld [vmem:[%s1378_s4 + $0x38] sm:$0xff] }
 0x32a   :  { %vm279_vm12 = vmor %vm277_vm11, %vm278_vm10  ;;  %487 = vmatpush.msra.mxu0 %v847_v23 }
 0x32b   :  { %v270_v31 = vsel %vm269_vm9, %v916_v17, %v266_v25  ;;  %v273_v32 = vmul.f32 %v918_v24, %v272_v28  ;;  %v845_v28 = vld [vmem:[%s1378_s4 + $0x28] sm:$0xff] }
 0x32c   :  { %v281_v33 = vmul.f32 %v270_v31, %v257_v29 }
 0x32d   :  { %v274_v35 = vmul.f32 0.5, %v273_v32 }
 0x32e   :  { %v286_v36 = vmul.f32 %v897_v30, %v281_v33 }
 0x32f   :  { %v275_v37 = vsub.f32 1.5, %v274_v35 }
 0x330   :  { %v291_v38 = vadd.f32 %v898_v34, %v286_v36 }
 0x331   :  { %v276_v39 = vmul.f32 %v918_v24, %v275_v37 }
 0x332   :  { %838 = vmatmul.msk.f32.vlgmr.msrb.gmra.mxu1 %vm157_vm5, %v291_v38 }
 0x333   :  { %v280_v41 = vsel %vm279_vm12, %v918_v24, %v276_v39  ;;  %v846_v24 = vld [vmem:[%s1378_s4 + $0x30] sm:$0xff]  ;;  %v901_v39 = vld [vmem:[%s1388_s14] ss:$0 sm:$0xff] }
 0x334   :  { %v282_v42 = vmul.f32 %v280_v41, %v258_v40  ;;  %488 = vmatpush.msra.mxu0 %v846_v24 }
 0x336   :  { %v287_v43 = vmul.f32 %v897_v30, %v282_v42  ;;  %489 = vmatpush.msra.mxu0 %v845_v28  ;;  %v872_v28 = vld [vmem:[%s1384_s10 + $0x68] sm:$0xff] }
 0x338   :  { %v292_v44 = vadd.f32 %v898_v34, %v287_v43 }
 0x33a   :  { %839 = vmatmul.msk.f32.gmra.mxu1 %vm157_vm5, %v292_v44 }
 0x3af   :  { %v324_v49 = vpop.f32.mrf.mxu1 }
 0x3b0   :  { %v325_v50 = vadd.f32 %v899_v48, %v324_v49  ;;  %v854_v49 = vld [vmem:[%s1380_s6 + $0x38] sm:$0xff] }
 0x3b1   :  { %526 = vmatpush.msra.mxu1 %v854_v49 }
 0x3b2   :  { %v330_v51 = vmax.f32 %v325_v50, 0.0  ;;  %v853_v50 = vld [vmem:[%s1380_s6 + $0x30] sm:$0xff] }
 0x3b3   :  { %527 = vmatpush.msra.mxu1 %v853_v50 }
 0x3b4   :  { %840 = vmatmul.msk.f32.vlgmr.msrb.gmra.mxu0 %vm344_vm13, %v330_v51 }
 0x3b7   :  { %v327_v52 = vpop.f32.mrf.mxu1 }
 0x3b8   :  { %v328_v53 = vadd.f32 %v899_v48, %v327_v52  ;;  %v844_v48 = vld [vmem:[%s1378_s4 + $0x20] sm:$0xff]  ;;  %s817_s4 = sshll.u32 %s1392_s18, 4  ;;  %s818_s4 = int_to_ptr.hbm [resolvable:$true] %s817_s4 }
 0x3b9   :  { %490 = vmatpush.msra.mxu0 %v844_v48  ;;  %v851_v52 = vld [vmem:[%s1380_s6 + $0x20] sm:$0xff] }
 0x3ba   :  { %v331_v54 = vmax.f32 %v328_v53, 0.0  ;;  %v903_v53 = vld [vmem:[%s1379_s5 + $0x1] ss:$0 sm:$0xff] }
 0x3bc   :  { %841 = vmatmul.msk.f32.vlgmr.msrb.gmra.mxu2 %vm344_vm13, %v331_v54 }
 0x431   :  { %v368_v56 = vpop.f32.mrf.mxu0 }
 0x432   :  { %v369_v57 = vadd.f32 %v900_v55, %v368_v56 }
 0x434   :  { %v374_v58 = vadd.f32 %v369_v57, %v291_v38 }
 0x436   :  { %v378_v59 = vsel %vm157_vm5, %v374_v58, 0.0  ;;  %v386_v60 = vmul.f32 %v374_v58, %v374_v58 }
 0x437   :  { %379 = vadd.xlane.f32.xlu1 %v378_v59 }
 0x438   :  { %v388_v61 = vsel %vm157_vm5, %v386_v60, 0.0 }
 0x43f   :  { %389 = vadd.xlane.f32.xlu1 %v388_v61  ;;  %v371_v63 = vpop.f32.mrf.mxu2 }
 0x440   :  { %v372_v0 = vadd.f32 %v900_v55, %v371_v63 }
 0x442   :  { %v375_v1 = vadd.f32 %v372_v0, %v292_v44  ;;  %v902_v44 = vld [vmem:[%s1389_s15] ss:$0 sm:$0xff] }
 0x444   :  { %v381_v2 = vsel %vm157_vm5, %v375_v1, 0.0  ;;  %v387_v3 = vmul.f32 %v375_v1, %v375_v1 }
 0x445   :  { %382 = vadd.xlane.f32.xlu0 %v381_v2 }
 0x446   :  { %v391_v4 = vsel %vm157_vm5, %v387_v3, 0.0 }
 0x447   :  { %392 = vadd.xlane.f32.xlu2 %v391_v4 }
 0x4aa   :  { %v380_v5 = vpop.xlane.xlu1 %379 }
 0x4ab   :  { %v384_v6 = vmul.f32 %v380_v5, %v1163_v62 }
 0x4ad   :  { %v396_v8 = vmul.f32 %v384_v6, %v384_v6  ;;  %v400_v36 = vsub.f32 %v374_v58, %v384_v6  ;;  %v904_v58 = vld [vmem:[%s1381_s7 + $0x1] ss:$0 sm:$0xff] }
 0x4b2   :  { %v390_v7 = vpop.xlane.xlu1 %389 }
 0x4b3   :  { %v394_v9 = vmul.f32 %v390_v7, %v1163_v62 }
 0x4b5   :  { %v398_v10 = vsub.f32 %v394_v9, %v396_v8  ;;  %v863_v8 = vld [vmem:[%s1382_s8 + $0x38] sm:$0xff]  ;;  %v862_v9 = vld [vmem:[%s1382_s8 + $0x30] sm:$0xff] }
 0x4b6   :  { %629 = vmatpush.msra.mxu2 %v863_v8 }
 0x4b7   :  { %v402_v11 = vadd.f32 1e-05, %v398_v10  ;;  %v861_v10 = vld [vmem:[%s1382_s8 + $0x28] sm:$0xff] }
 0x4b8   :  { %v383_v12 = vpop.xlane.xlu0 %382  ;;  %630 = vmatpush.msra.mxu2 %v862_v9 }
 0x4b9   :  { %919 = vrsqrt.f32 %v402_v11  ;;  %v385_v13 = vmul.f32 %v383_v12, %v1163_v62  ;;  %vm410_vm15 = vweird.f32 %v402_v11 }
 0x4ba   :  { %v393_v14 = vpop.xlane.xlu2 %392  ;;  %631 = vmatpush.msra.mxu2 %v861_v10 }
 0x4bb   :  { %v397_v15 = vmul.f32 %v385_v13, %v385_v13  ;;  %v395_v16 = vmul.f32 %v393_v14, %v1163_v62  ;;  %v401_v38 = vsub.f32 %v375_v1, %v385_v13 }
 0x4bd   :  { %v399_v17 = vsub.f32 %v395_v16, %v397_v15 }
 0x4bf   :  { %v920_v18 = vpop.eup %919  ;;  %v403_v19 = vadd.f32 1e-05, %v399_v17 }
 0x4c0   :  { %v405_v20 = vmul.f32 %v920_v18, %v402_v11  ;;  %vm411_vm14 = vweird.f32 %v920_v18  ;;  %v860_v11 = vld [vmem:[%s1382_s8 + $0x20] sm:$0xff] }
 0x4c1   :  { %921 = vrsqrt.f32 %v403_v19  ;;  %vm412_vm0 = vmor %vm410_vm15, %vm411_vm14  ;;  %vm420_vm2 = vweird.f32 %v403_v19  ;;  %632 = vmatpush.msra.mxu2 %v860_v11 }
 0x4c2   :  { %v406_v21 = vmul.f32 %v920_v18, %v405_v20 }
 0x4c4   :  { %v407_v22 = vmul.f32 0.5, %v406_v21  ;;  %v874_v21 = vld [vmem:[%s1384_s10 + $0x78] sm:$0xff] }
 0x4c6   :  { %v408_v25 = vsub.f32 1.5, %v407_v22  ;;  %v873_v22 = vld [vmem:[%s1384_s10 + $0x70] sm:$0xff] }
 0x4c7   :  { %v922_v29 = vpop.eup %921 }
 0x4c8   :  { %v415_v30 = vmul.f32 %v922_v29, %v403_v19  ;;  %v409_v32 = vmul.f32 %v920_v18, %v408_v25  ;;  %vm421_vm1 = vweird.f32 %v922_v29 }
 0x4c9   :  { %vm422_vm3 = vmor %vm420_vm2, %vm421_vm1 }
 0x4ca   :  { %v416_v31 = vmul.f32 %v922_v29, %v415_v30  ;;  %v413_v35 = vsel %vm412_vm0, %v920_v18, %v409_v32  ;;  %v871_v30 = vld [vmem:[%s1384_s10 + $0x60] sm:$0xff] }
 0x4cb   :  { %v424_v40 = vmul.f32 %v413_v35, %v400_v36 }
 0x4cc   :  { %v417_v33 = vmul.f32 0.5, %v416_v31 }
 0x4cd   :  { %v429_v45 = vmul.f32 %v901_v39, %v424_v40 }
 0x4ce   :  { %v418_v34 = vsub.f32 1.5, %v417_v33  ;;  %v870_v33 = vld [vmem:[%s1384_s10 + $0x58] sm:$0xff] }
 0x4cf   :  { %v434_v47 = vadd.f32 %v902_v44, %v429_v45 }
 0x4d0   :  { %v419_v37 = vmul.f32 %v922_v29, %v418_v34 }
 0x4d2   :  { %v423_v41 = vsel %vm422_vm3, %v922_v29, %v419_v37 }
 0x4d3   :  { %v425_v42 = vmul.f32 %v423_v41, %v401_v38 }
 0x4d5   :  { %v430_v43 = vmul.f32 %v901_v39, %v425_v42  ;;  %v905_v42 = vld [vmem:[%s1386_s12 + $0x1] ss:$0 sm:$0xff] }
 0x4d7   :  { %v435_v46 = vadd.f32 %v902_v44, %v430_v43 }
 0x4d9   :  { %450 = vmatpush.msrb.mxu3 %v435_v46 }
 0x4db   :  { %451 = vmatpush.msrb.mxu3 %v434_v47 }
 0x4dc   :  { %842 = vmatmul.msk.f32.vlgmr.msrb.gmra.mxu3 %vm119_vm4, %v1107_v26 }
 0x4dd   :  { %670 = vmatpush.msra.mxu3 %v874_v21 }
 0x4df   :  { %671 = vmatpush.msra.mxu3 %v873_v22 }
 0x4e1   :  { %672 = vmatpush.msra.mxu3 %v872_v28 }
 0x4e3   :  { %673 = vmatpush.msra.mxu3 %v871_v30 }
 0x4e4   :  { %843 = vmatmul.msk.f32.gmra.mxu3 %vm119_vm4, %v1114_v27  ;;  %v852_v27 = vld [vmem:[%s1380_s6 + $0x28] sm:$0xff] }
 0x4e5   :  { %528 = vmatpush.msra.mxu1 %v852_v27  ;;  %674 = vmatpush.msra.mxu3 %v870_v33 }
 0x4e7   :  { %529 = vmatpush.msra.mxu1 %v851_v52 }
 0x55f   :  { %v453_v51 = vpop.f32.mrf.mxu3 }
 0x560   :  { %849 = vmatmul.msk.f32.vlgmr.msra.gmra.mxu0 %vm157_vm5, %v453_v51 }
 0x567   :  { %v456_v26 = vpop.f32.mrf.mxu3 }
 0x568   :  { %850 = vmatmul.msk.f32.gmra.mxu0 %vm157_vm5, %v456_v26 }
 0x5dd   :  { %v492_v54 = vpop.f32.mrf.mxu0 }
 0x5de   :  { %v493_v55 = vadd.f32 %v903_v53, %v492_v54 }
 0x5e0   :  { %856 = vmatmul.msk.f32.vlgmr.msra.gmra.mxu1 %vm157_vm5, %v493_v55  ;;  %v869_v55 = vld [vmem:[%s1384_s10 + $0x50] sm:$0xff] }
 0x5e1   :  { %675 = vmatpush.msra.mxu3 %v869_v55 }
 0x5e5   :  { %v495_v56 = vpop.f32.mrf.mxu0 }
 0x5e6   :  { %v496_v57 = vadd.f32 %v903_v53, %v495_v56  ;;  %v868_v56 = vld [vmem:[%s1384_s10 + $0x48] sm:$0xff] }
 0x5e7   :  { %676 = vmatpush.msra.mxu3 %v868_v56 }
 0x5e8   :  { %857 = vmatmul.msk.f32.gmra.mxu1 %vm157_vm5, %v496_v57  ;;  %v867_v57 = vld [vmem:[%s1384_s10 + $0x40] sm:$0xff] }
 0x5e9   :  { %677 = vmatpush.msra.mxu3 %v867_v57 }
 0x65d   :  { %v531_v59 = vpop.f32.mrf.mxu1 }
 0x65e   :  { %v532_v60 = vadd.f32 %v904_v58, %v531_v59 }
 0x660   :  { %v1269_v61 = vadd.f32 %v532_v60, %v434_v47 }
 0x662   :  { %v543_v63 = vsel %vm157_vm5, %v1269_v61, 0.0  ;;  %v551_v0 = vmul.f32 %v1269_v61, %v1269_v61 }
 0x663   :  { %544 = vadd.xlane.f32.xlu2 %v543_v63 }
 0x664   :  { %v553_v1 = vsel %vm157_vm5, %v551_v0, 0.0 }
 0x665   :  { %554 = vadd.xlane.f32.xlu1 %v553_v1  ;;  %v534_v2 = vpop.f32.mrf.mxu1 }
 0x666   :  { %v535_v3 = vadd.f32 %v904_v58, %v534_v2  ;;  %v907_v58 = vld [vmem:[%s1383_s9 + $0x1] ss:$0 sm:$0xff] }
 0x667   :  { %v908_v2 = vld [vmem:[%s1385_s11 + $0x1] ss:$0 sm:$0xff] }
 0x668   :  { %v1276_v4 = vadd.f32 %v535_v3, %v435_v46  ;;  %v906_v46 = vld [vmem:[%s1387_s13 + $0x1] ss:$0 sm:$0xff] }
 0x66a   :  { %v546_v5 = vsel %vm157_vm5, %v1276_v4, 0.0  ;;  %v552_v6 = vmul.f32 %v1276_v4, %v1276_v4 }
 0x66b   :  { %547 = vadd.xlane.f32.xlu2 %v546_v5 }
 0x66c   :  { %v556_v7 = vsel %vm157_vm5, %v552_v6, 0.0 }
 0x66d   :  { %557 = vadd.xlane.f32.xlu1 %v556_v7 }
 0x6d6   :  { %v545_v12 = vpop.xlane.xlu2 %544 }
 0x6d7   :  { %v549_v13 = vmul.f32 %v545_v12, %v1163_v62 }
 0x6d8   :  { %v555_v14 = vpop.xlane.xlu1 %554 }
 0x6d9   :  { %v561_v15 = vmul.f32 %v549_v13, %v549_v13  ;;  %v559_v16 = vmul.f32 %v555_v14, %v1163_v62  ;;  %v565_v41 = vsub.f32 %v1269_v61, %v549_v13 }
 0x6db   :  { %v563_v17 = vsub.f32 %v559_v16, %v561_v15 }
 0x6dd   :  { %v567_v18 = vadd.f32 1e-05, %v563_v17 }
 0x6de   :  { %v548_v19 = vpop.xlane.xlu2 %547 }
 0x6df   :  { %923 = vrsqrt.f32 %v567_v18  ;;  %v550_v20 = vmul.f32 %v548_v19, %v1163_v62  ;;  %vm575_vm6 = vweird.f32 %v567_v18 }
 0x6e0   :  { %v558_v23 = vpop.xlane.xlu1 %557 }
 0x6e1   :  { %v562_v24 = vmul.f32 %v550_v20, %v550_v20  ;;  %v560_v25 = vmul.f32 %v558_v23, %v1163_v62  ;;  %v566_v26 = vsub.f32 %v1276_v4, %v550_v20 }
 0x6e3   :  { %v564_v29 = vsub.f32 %v560_v25, %v562_v24 }
 0x6e5   :  { %v924_v31 = vpop.eup %923  ;;  %v568_v32 = vadd.f32 1e-05, %v564_v29 }
 0x6e6   :  { %v570_v34 = vmul.f32 %v924_v31, %v567_v18  ;;  %vm576_vm4 = vweird.f32 %v924_v31 }
 0x6e7   :  { %925 = vrsqrt.f32 %v568_v32  ;;  %vm577_vm7 = vmor %vm575_vm6, %vm576_vm4  ;;  %vm585_vm9 = vweird.f32 %v568_v32 }
 0x6e8   :  { %v571_v35 = vmul.f32 %v924_v31, %v570_v34 }
 0x6ea   :  { %v572_v36 = vmul.f32 0.5, %v571_v35 }
 0x6ec   :  { %v573_v37 = vsub.f32 1.5, %v572_v36 }
 0x6ed   :  { %v926_v38 = vpop.eup %925 }
 0x6ee   :  { %v574_v39 = vmul.f32 %v924_v31, %v573_v37  ;;  %v580_v40 = vmul.f32 %v926_v38, %v568_v32  ;;  %vm586_vm8 = vweird.f32 %v926_v38 }
 0x6ef   :  { %vm587_vm10 = vmor %vm585_vm9, %vm586_vm8 }
 0x6f0   :  { %v578_v43 = vsel %vm577_vm7, %v924_v31, %v574_v39  ;;  %v581_v44 = vmul.f32 %v926_v38, %v580_v40  ;;  %v909_v40 = vld [vmem:[%s1388_s14 + $0x1] ss:$0 sm:$0xff] }
 0x6f1   :  { %v589_v45 = vmul.f32 %v578_v43, %v565_v41 }
 0x6f2   :  { %v582_v47 = vmul.f32 0.5, %v581_v44  ;;  %v910_v44 = vld [vmem:[%s1389_s15 + $0x1] ss:$0 sm:$0xff] }
 0x6f3   :  { %v594_v48 = vmul.f32 %v905_v42, %v589_v45 }
 0x6f4   :  { %v583_v49 = vsub.f32 1.5, %v582_v47 }
 0x6f5   :  { %v599_v50 = vadd.f32 %v906_v46, %v594_v48 }
 0x6f6   :  { %v584_v51 = vmul.f32 %v926_v38, %v583_v49 }
 0x6f7   :  { %865 = vmatmul.msk.f32.vlgmr.msra.gmra.mxu2 %vm157_vm5, %v599_v50 }
 0x6f8   :  { %v588_v27 = vsel %vm587_vm10, %v926_v38, %v584_v51 }
 0x6f9   :  { %v590_v52 = vmul.f32 %v588_v27, %v566_v26 }
 0x6fb   :  { %v595_v53 = vmul.f32 %v905_v42, %v590_v52 }
 0x6fd   :  { %v600_v54 = vadd.f32 %v906_v46, %v595_v53 }
 0x6ff   :  { %866 = vmatmul.msk.f32.gmra.mxu2 %vm157_vm5, %v600_v54 }
 0x77a   :  { %v634_v59 = vpop.f32.mrf.mxu2 }
 0x77b   :  { %v635_v60 = vadd.f32 %v907_v58, %v634_v59 }
 0x77d   :  { %v640_v61 = vmax.f32 %v635_v60, 0.0 }
 0x77f   :  { %876 = vmatmul.msk.f32.vlgmr.msra.gmra.mxu3 %vm344_vm13, %v640_v61 }
 0x782   :  { %v637_v63 = vpop.f32.mrf.mxu2 }
 0x783   :  { %v638_v0 = vadd.f32 %v907_v58, %v637_v63 }
 0x785   :  { %v641_v1 = vmax.f32 %v638_v0, 0.0 }
 0x787   :  { %877 = vmatmul.msk.f32.gmra.mxu3 %vm344_vm13, %v641_v1 }
 0x802   :  { %v679_v3 = vpop.f32.mrf.mxu3 }
 0x803   :  { %v680_v4 = vadd.f32 %v908_v2, %v679_v3 }
 0x805   :  { %v685_v5 = vadd.f32 %v680_v4, %v599_v50 }
 0x807   :  { %v691_v6 = vsel %vm157_vm5, %v685_v5, 0.0  ;;  %v699_v9 = vmul.f32 %v685_v5, %v685_v5 }
 0x808   :  { %692 = vadd.xlane.f32.xlu2 %v691_v6 }
 0x809   :  { %v701_v11 = vsel %vm157_vm5, %v699_v9, 0.0 }
 0x80a   :  { %v682_v7 = vpop.f32.mrf.mxu3 }
 0x80b   :  { %v683_v8 = vadd.f32 %v908_v2, %v682_v7 }
 0x80d   :  { %v686_v10 = vadd.f32 %v683_v8, %v600_v54 }
 0x80f   :  { %v694_v12 = vsel %vm157_vm5, %v686_v10, 0.0  ;;  %v700_v13 = vmul.f32 %v686_v10, %v686_v10 }
 0x810   :  { %702 = vadd.xlane.f32.xlu2 %v701_v11  ;;  %695 = vadd.xlane.f32.xlu1 %v694_v12 }
 0x811   :  { %v704_v14 = vsel %vm157_vm5, %v700_v13, 0.0 }
 0x818   :  { %705 = vadd.xlane.f32.xlu1 %v704_v14 }
 0x87b   :  { %v693_v15 = vpop.xlane.xlu2 %692 }
 0x87c   :  { %v697_v16 = vmul.f32 %v693_v15, %v1163_v62 }
 0x87e   :  { %v709_v19 = vmul.f32 %v697_v16, %v697_v16  ;;  %v713_v39 = vsub.f32 %v685_v5, %v697_v16 }
 0x883   :  { %v696_v17 = vpop.xlane.xlu1 %695  ;;  %v703_v18 = vpop.xlane.xlu2 %702 }
 0x884   :  { %v707_v20 = vmul.f32 %v703_v18, %v1163_v62  ;;  %v698_v22 = vmul.f32 %v696_v17, %v1163_v62 }
 0x886   :  { %v711_v21 = vsub.f32 %v707_v20, %v709_v19  ;;  %v710_v25 = vmul.f32 %v698_v22, %v698_v22  ;;  %v714_v50 = vsub.f32 %v686_v10, %v698_v22  ;;  %v911_v19 = vld [vmem:[%s1390_s16] ss:$0 sm:$0xff]  ;;  %s964_s16 = smov [#allocation2]  }
 0x887   :  { %v912_v22 = vld [vmem:[%s1391_s17] ss:$0 sm:$0xff]  ;;  %s815_s28 = sshll.u32 %s964_s16, 4  ;;  %s965_s17 = smov 128   ;;  %s816_s28 = int_to_ptr.vmem [resolvable:$true] %s815_s28 }
 0x888   :  { %v715_v23 = vadd.f32 1e-05, %v711_v21 }
 0x88a   :  { %927 = vrsqrt.f32 %v715_v23  ;;  %vm723_vm12 = vweird.f32 %v715_v23 }
 0x88b   :  { %v706_v24 = vpop.xlane.xlu1 %705 }
 0x88c   :  { %v708_v28 = vmul.f32 %v706_v24, %v1163_v62 }
 0x88e   :  { %v712_v29 = vsub.f32 %v708_v28, %v710_v25 }
 0x890   :  { %v928_v30 = vpop.eup %927  ;;  %v716_v31 = vadd.f32 1e-05, %v712_v29 }
 0x891   :  { %v718_v32 = vmul.f32 %v928_v30, %v715_v23  ;;  %vm724_vm11 = vweird.f32 %v928_v30 }
 0x892   :  { %929 = vrsqrt.f32 %v716_v31  ;;  %vm725_vm13 = vmor %vm723_vm12, %vm724_vm11  ;;  %vm733_vm15 = vweird.f32 %v716_v31 }
 0x893   :  { %v719_v33 = vmul.f32 %v928_v30, %v718_v32 }
 0x895   :  { %v720_v34 = vmul.f32 0.5, %v719_v33 }
 0x897   :  { %v721_v35 = vsub.f32 1.5, %v720_v34 }
 0x898   :  { %v930_v36 = vpop.eup %929 }
 0x899   :  { %v722_v37 = vmul.f32 %v928_v30, %v721_v35  ;;  %v728_v38 = vmul.f32 %v930_v36, %v716_v31  ;;  %vm734_vm14 = vweird.f32 %v930_v36 }
 0x89a   :  { %vm735_vm0 = vmor %vm733_vm15, %vm734_vm14 }
 0x89b   :  { %v729_v41 = vmul.f32 %v930_v36, %v728_v38  ;;  %v726_v42 = vsel %vm725_vm13, %v928_v30, %v722_v37 }
 0x89c   :  { %v737_v43 = vmul.f32 %v726_v42, %v713_v39 }
 0x89d   :  { %v730_v45 = vmul.f32 0.5, %v729_v41 }
 0x89e   :  { %v742_v46 = vmul.f32 %v909_v40, %v737_v43 }
 0x89f   :  { %v731_v47 = vsub.f32 1.5, %v730_v45 }
 0x8a0   :  { %v747_v48 = vadd.f32 %v910_v44, %v742_v46 }
 0x8a1   :  { %v732_v49 = vmul.f32 %v930_v36, %v731_v47 }
 0x8a2   :  { %v751_v51 = vsel %vm157_vm5, %v747_v48, 0.0  ;;  %v759_v26 = vmul.f32 %v747_v48, %v747_v48 }
 0x8a3   :  { %752 = vadd.xlane.f32.xlu2 %v751_v51  ;;  %v736_v27 = vsel %vm735_vm0, %v930_v36, %v732_v49 }
 0x8a4   :  { %v761_v52 = vsel %vm157_vm5, %v759_v26, 0.0  ;;  %v738_v53 = vmul.f32 %v736_v27, %v714_v50 }
 0x8a5   :  { %762 = vadd.xlane.f32.xlu1 %v761_v52 }
 0x8a6   :  { %v743_v54 = vmul.f32 %v909_v40, %v738_v53 }
 0x8a8   :  { %v748_v55 = vadd.f32 %v910_v44, %v743_v54 }
 0x8aa   :  { %v754_v56 = vsel %vm157_vm5, %v748_v55, 0.0  ;;  %v760_v57 = vmul.f32 %v748_v55, %v748_v55 }
 0x8ab   :  { %755 = vadd.xlane.f32.xlu0 %v754_v56 }
 0x8ac   :  { %v764_v58 = vsel %vm157_vm5, %v760_v57, 0.0 }
 0x8ad   :  { %765 = vadd.xlane.f32.xlu2 %v764_v58 }
 0x916   :  { %v753_v59 = vpop.xlane.xlu2 %752 }
 0x917   :  { %v757_v60 = vmul.f32 %v753_v59, %v1163_v62 }
 0x918   :  { %v763_v61 = vpop.xlane.xlu1 %762 }
 0x919   :  { %v769_v63 = vmul.f32 %v757_v60, %v757_v60  ;;  %v767_v0 = vmul.f32 %v763_v61, %v1163_v62  ;;  %v773_v18 = vsub.f32 %v747_v48, %v757_v60 }
 0x91b   :  { %v771_v1 = vsub.f32 %v767_v0, %v769_v63 }
 0x91d   :  { %v775_v2 = vadd.f32 1e-05, %v771_v1 }
 0x91e   :  { %v756_v3 = vpop.xlane.xlu0 %755 }
 0x91f   :  { %931 = vrsqrt.f32 %v775_v2  ;;  %v758_v4 = vmul.f32 %v756_v3, %v1163_v62  ;;  %vm783_vm2 = vweird.f32 %v775_v2 }
 0x920   :  { %v766_v5 = vpop.xlane.xlu2 %765 }
 0x921   :  { %v770_v6 = vmul.f32 %v758_v4, %v758_v4  ;;  %v768_v7 = vmul.f32 %v766_v5, %v1163_v62  ;;  %v774_v30 = vsub.f32 %v748_v55, %v758_v4 }
 0x923   :  { %v772_v8 = vsub.f32 %v768_v7, %v770_v6 }
 0x925   :  { %v932_v9 = vpop.eup %931  ;;  %v776_v10 = vadd.f32 1e-05, %v772_v8 }
 0x926   :  { %v778_v11 = vmul.f32 %v932_v9, %v775_v2  ;;  %vm784_vm1 = vweird.f32 %v932_v9 }
 0x927   :  { %933 = vrsqrt.f32 %v776_v10  ;;  %vm785_vm3 = vmor %vm783_vm2, %vm784_vm1  ;;  %vm793_vm6 = vweird.f32 %v776_v10 }
 0x928   :  { %v779_v12 = vmul.f32 %v932_v9, %v778_v11 }
 0x92a   :  { %v780_v13 = vmul.f32 0.5, %v779_v12 }
 0x92c   :  { %v781_v14 = vsub.f32 1.5, %v780_v13 }
 0x92d   :  { %v934_v15 = vpop.eup %933 }
 0x92e   :  { %v782_v16 = vmul.f32 %v932_v9, %v781_v14  ;;  %v788_v17 = vmul.f32 %v934_v15, %v776_v10  ;;  %vm794_vm4 = vweird.f32 %v934_v15 }
 0x92f   :  { %vm795_vm7 = vmor %vm793_vm6, %vm794_vm4 }
 0x930   :  { %v786_v62 = vsel %vm785_vm3, %v932_v9, %v782_v16  ;;  %v789_v20 = vmul.f32 %v934_v15, %v788_v17 }
 0x931   :  { %v797_v21 = vmul.f32 %v786_v62, %v773_v18 }
 0x932   :  { %v790_v23 = vmul.f32 0.5, %v789_v20 }
 0x933   :  { %v802_v24 = vmul.f32 %v911_v19, %v797_v21 }
 0x934   :  { %v791_v25 = vsub.f32 1.5, %v790_v23 }
 0x935   :  { %v807_v28 = vadd.f32 %v912_v22, %v802_v24 }
 0x936   :  { %v792_v29 = vmul.f32 %v934_v15, %v791_v25 }
 0x937   :  { %809 = vst.msk [vmem:[#allocation2] sm:$0xff] %vm157_vm5, %v807_v28 }
 0x938   :  { %v796_v31 = vsel %vm795_vm7, %v934_v15, %v792_v29 }
 0x939   :  { %v798_v32 = vmul.f32 %v796_v31, %v774_v30 }
 0x93b   :  { %v803_v33 = vmul.f32 %v911_v19, %v798_v32 }
 0x93d   :  { %v808_v34 = vadd.f32 %v912_v22, %v803_v33 }
 0x93f   :  { %810 = vst.msk [vmem:[#allocation2 + $0x8] sm:$0xff] %vm157_vm5, %v808_v34 }
 0x940   :  { %823 = dma.vmem_to_hbm [thread:$0]  %s816_s28, 256, %s818_s4, [#allocation3], %s965_s17, %s965_s17, %s966_s29  }
 0x941   :  { %959 = dma.done.wait [#allocation3], 256  }
 0x942   :  { %960 = vsyncadd [#allocation3], 4294967040 }
 0x943   :  { %828 = vsyncpa [#allocation3], 1 }

</bundles_post_ra>
